<compile_context>
chip_gen: v7x
topology: tpu7x:2x2x1
jax: 0.10.0
libtpu: 0.0.40
codegen_flags: <defaults>
</compile_context>

<pallas_src>
import math

import jax
import jax.numpy as jnp
from jax import lax
from jax.experimental import pallas as pl
from jax.experimental.pallas import tpu as pltpu


def _round_up(x, m):
    return ((x + m - 1) // m) * m


def _pad_axis(a, axis, target):
    pad = target - a.shape[axis]
    if pad == 0:
        return a
    widths = [(0, 0)] * a.ndim
    widths[axis] = (0, pad)
    return jnp.pad(a, widths)


def _pick_tile(n_pad, target, *, granule=128, prefer_multi=False):
    """Largest multiple-of-`granule` divisor of n_pad that is <= target.

    If prefer_multi, additionally try to keep >= 2 tiles so a 'parallel' grid
    axis can split across the two TensorCores of a v7x chip."""
    candidates = [t for t in range(granule, n_pad + 1, granule) if n_pad % t == 0]
    if not candidates:
        return n_pad
    ok = [t for t in candidates if t <= target]
    if prefer_multi:
        multi = [t for t in ok if n_pad // t >= 2]
        if multi:
            return max(multi)
    if ok:
        return max(ok)
    return min(candidates)


def _vmem_limit_bytes(default_capacity=64 * 1024 * 1024):
    """Generation-aware scoped-VMEM budget: ~3/4 of physical capacity
    (96 MiB on v5e/v6e with 128 MiB, 48 MiB on v7x with 64 MiB per TC)."""
    try:
        cap = int(getattr(pltpu.get_tpu_info(), "vmem_capacity_bytes",
                          default_capacity))
    except Exception:
        cap = default_capacity
    return cap * 3 // 4


def _estimate_kernel2_vmem(block_m, block_k, f_pad, f_in, c_bytes):
    out_b = block_m * f_pad * 4 * 2            # f32 accumulator (double-buffered)
    x_b = block_m * f_in * c_bytes * 2         # x[m] tile
    wc_b = f_in * f_pad * c_bytes * 2          # W_C (resident)
    bias_b = f_pad * 4 * 2
    adj_b = block_m * block_k * c_bytes * 2    # streamed adj tile
    xw_b = block_k * f_pad * c_bytes * 2       # streamed xw tile
    return out_b + x_b + wc_b + bias_b + adj_b + xw_b


def prepare_adj(adj, *, compute_dtype=jnp.bfloat16):
    """Pad adj [O, N, N] -> [O, N_pad, N_pad] (128-lane granule) and cast to the
    streaming dtype ONCE, outside the per-call hot path.  The host-side pad+cast
    moves ~3x the kernel's own adj bytes, so do not redo it every call."""
    n = adj.shape[1]
    n_pad = _round_up(n, 128)
    adj_p = _pad_axis(_pad_axis(adj, 1, n_pad), 2, n_pad)
    return adj_p.astype(compute_dtype)


# ---------------------------------------------------------------------------
# Kernel 1: feature transform.  grid = (m_tiles,)
#   xw[o] = x @ W_A[o]   for every order, unrolled, W_A stack resident.
# ---------------------------------------------------------------------------
def _feature_transform_kernel(x_ref, wa_ref, xw_ref):
    x = x_ref[...]
    for o in range(wa_ref.shape[0]):          # static unroll over orders
        xw_ref[o] = jnp.dot(
            x, wa_ref[o], preferred_element_type=jnp.float32
        ).astype(xw_ref.dtype)


# ---------------------------------------------------------------------------
# Kernel 2: tiled adjacency aggregation.  grid = (m_tiles, order, k_tiles)
#   The output block index depends only on m, so the f32 accumulator stays
#   resident in VMEM across the whole (order, k) reduction.  The base term
#   (x @ W_C + bias) is fused into the accumulator init so it never round-trips
#   through HBM.
# ---------------------------------------------------------------------------
def _adj_aggregate_kernel(x_ref, wc_ref, bias_ref, adj_ref, xw_ref, out_ref):
    o = pl.program_id(1)
    k = pl.program_id(2)

    @pl.when((o == 0) & (k == 0))
    def _():
        out_ref[...] = (
            jnp.dot(x_ref[...], wc_ref[...], preferred_element_type=jnp.float32)
            + bias_ref[...]
        )

    out_ref[...] += jnp.dot(
        adj_ref[...], xw_ref[...], preferred_element_type=jnp.float32
    )
    # TODO(synk): optional adj quantization (fp8 on v7x, int8 on v5e/v6e) with
    # per-tile scales would halve the dominant adj HBM stream.


def graph_convolution(x, weight_c, weight_a, adj, bias=None, *,
                      block_m=256, block_k=512, compute_dtype=jnp.bfloat16):
    """x: [N, F_in], weight_c: [F_in, F_out], weight_a: [O, F_in, F_out],
    adj: [O, N, N] (or pre-prepared [O, N_pad, N_pad] in compute_dtype),
    bias: [F_out] or None  ->  [N, F_out] float32."""
    n, f_in = x.shape
    f_out = weight_c.shape[1]
    max_order = weight_a.shape[0]

    if bias is None:
        bias = jnp.zeros((f_out,), jnp.float32)

    # Pad N only to the 128-lane granule (NOT to a multiple of the tile) so big
    # tiles never inflate adj HBM traffic quadratically.  Output features are
    # padded to 128 lanes for lane-dense stores.
    n_pad = _round_up(n, 128)
    f_pad = _round_up(f_out, 128)

    # Decoupled tiles: block_m sizes the resident f32 accumulator, block_k the
    # streamed adj contraction.  Both must divide n_pad; keep >= 2 m-tiles when
    # possible so the 'parallel' m axis can use both v7x TensorCores.
    blk_m = _pick_tile(n_pad, block_m, prefer_multi=True)
    blk_k = _pick_tile(n_pad, block_k)

    vmem_limit = _vmem_limit_bytes()
    c_bytes = jnp.dtype(compute_dtype).itemsize
    while (_estimate_kernel2_vmem(blk_m, blk_k, f_pad, f_in, c_bytes) > vmem_limit
           and blk_k > 128):
        blk_k = _pick_tile(n_pad, blk_k // 2)
    while (_estimate_kernel2_vmem(blk_m, blk_k, f_pad, f_in, c_bytes) > vmem_limit
           and blk_m > 128):
        blk_m = _pick_tile(n_pad, blk_m // 2, prefer_multi=True)
    # TODO(synk): for very large F_out on v7x, add an F_out tile axis to kernel 2
    # (keep the F tile as large as VMEM allows; each extra F-tile re-reads adj).

    m_tiles = n_pad // blk_m
    k_tiles = n_pad // blk_k

    # Narrow the MXU inputs to compute_dtype (f32 x f32 matmuls cost 3-6x on the
    # MXU and double the DMA streams); accumulation stays f32.  Padding is zero,
    # so padded rows/cols contribute nothing to real outputs.
    x_p = _pad_axis(x, 0, n_pad).astype(compute_dtype)                   # [N_pad, F_in]
    wc_p = _pad_axis(weight_c, 1, f_pad).astype(compute_dtype)           # [F_in, F_pad]
    wa_p = _pad_axis(weight_a, 2, f_pad).astype(compute_dtype)           # [O, F_in, F_pad]
    bias_p = _pad_axis(bias.astype(jnp.float32), 0, f_pad).reshape(1, f_pad)

    # adj should ideally be prepared once (prepare_adj) outside the hot path.
    if adj.shape[1:] == (n_pad, n_pad) and adj.dtype == jnp.dtype(compute_dtype):
        adj_p = adj
    else:
        adj_p = prepare_adj(adj, compute_dtype=compute_dtype)

    # ---- pass 1: feature transform (all orders per grid step) -------------
    xw = pl.pallas_call(
        _feature_transform_kernel,
        out_shape=jax.ShapeDtypeStruct((max_order, n_pad, f_pad), compute_dtype),
        grid_spec=pltpu.PrefetchScalarGridSpec(
            num_scalar_prefetch=0,
            grid=(m_tiles,),
            in_specs=[
                pl.BlockSpec((blk_m, f_in), lambda m: (m, 0)),             # x row tile
                pl.BlockSpec((max_order, f_in, f_pad), lambda m: (0, 0, 0)),  # W_A stack (resident)
            ],
            out_specs=pl.BlockSpec((max_order, blk_m, f_pad), lambda m: (0, m, 0)),
        ),
        compiler_params=pltpu.CompilerParams(
            dimension_semantics=("parallel",),
            vmem_limit_bytes=vmem_limit,
        ),
    )(x_p, wa_p)

    # ---- pass 2: tiled adj[i] @ xw[i] accumulation (base fused into init) --
    out_p = pl.pallas_call(
        _adj_aggregate_kernel,
        out_shape=jax.ShapeDtypeStruct((n_pad, f_pad), jnp.float32),
        grid_spec=pltpu.PrefetchScalarGridSpec(
            num_scalar_prefetch=0,
            grid=(m_tiles, max_order, k_tiles),
            in_specs=[
                pl.BlockSpec((blk_m, f_in), lambda m, o, k: (m, 0)),            # x[m] (resident over o,k)
                pl.BlockSpec((f_in, f_pad), lambda m, o, k: (0, 0)),            # W_C (resident)
                pl.BlockSpec((1, f_pad), lambda m, o, k: (0, 0)),               # bias (resident)
                pl.BlockSpec((None, blk_m, blk_k), lambda m, o, k: (o, m, k)),  # adj tile (streamed)
                pl.BlockSpec((None, blk_k, f_pad), lambda m, o, k: (o, k, 0)),  # xw tile (streamed)
            ],
            out_specs=pl.BlockSpec((blk_m, f_pad), lambda m, o, k: (m, 0)),
        ),
        compiler_params=pltpu.CompilerParams(
            dimension_semantics=("parallel", "arbitrary", "arbitrary"),
            vmem_limit_bytes=vmem_limit,
        ),
    )(x_p, wc_p, bias_p, adj_p, xw)

    return out_p[:n, :f_out]


def _reference(x, weight_c, weight_a, adj, bias):
    hp = lax.Precision.HIGHEST
    out = jnp.dot(x, weight_c, precision=hp)
    for i in range(weight_a.shape[0]):
        out = out + jnp.dot(adj[i], jnp.dot(x, weight_a[i], precision=hp), precision=hp)
    return out + bias


if __name__ == "__main__":
    # Small shapes consistent with the module's forward pass; chosen so that
    # node-dim padding (200 -> 256), feature padding (96 -> 128), multiple
    # m-tiles and a multi-tile (order, k) reduction are all exercised.
    num_nodes = 200
    in_features = 48
    out_features = 96
    max_order = 2

    key = jax.random.PRNGKey(0)
    k_x, k_adj, k_wc, k_wa, k_b = jax.random.split(key, 5)

    # Deterministic parameter init mirroring reset_parameters():
    # uniform(-stdv, stdv) with stdv = 1/sqrt(out_features).
    stdv = 1.0 / math.sqrt(out_features)
    weight_c = jax.random.uniform(
        k_wc, (in_features, out_features), jnp.float32, -stdv, stdv
    )
    weight_a = jax.random.uniform(
        k_wa, (max_order, in_features, out_features), jnp.float32, -stdv, stdv
    )
    bias = jax.random.uniform(k_b, (out_features,), jnp.float32, -stdv, stdv)

    x = jax.random.normal(k_x, (num_nodes, in_features), jnp.float32)
    adj = jax.random.uniform(k_adj, (max_order, num_nodes, num_nodes), jnp.float32)

    ref = _reference(x, weight_c, weight_a, adj, bias)

    # Fast path: adj padded + cast to bf16 ONCE outside the hot path, bf16 MXU
    # streams, f32 accumulation.  Tolerance accounts for bf16 input quantization
    # over the ~200-node adjacency sums.
    adj_bf16 = prepare_adj(adj, compute_dtype=jnp.bfloat16)
    out_fast = graph_convolution(
        x, weight_c, weight_a, adj_bf16, bias, compute_dtype=jnp.bfloat16
    )
    out_fast = jax.block_until_ready(out_fast)
    assert out_fast.shape == (num_nodes, out_features)
    assert jnp.allclose(out_fast, ref, rtol=5e-2, atol=1e-1), "bf16 path mismatch"

    # Full-precision path (f32 streams, multi-pass MXU): tight semantics check.
    # block_k=128 here deliberately exercises k_tiles > 1 in the reduction grid.
    adj_f32 = prepare_adj(adj, compute_dtype=jnp.float32)
    out_f32 = graph_convolution(
        x, weight_c, weight_a, adj_f32, bias,
        block_m=128, block_k=128, compute_dtype=jnp.float32
    )
    out_f32 = jax.block_until_ready(out_f32)
    assert jnp.allclose(out_f32, ref, rtol=1e-3, atol=1e-3), "f32 path mismatch"

    print("KERNEL_OK")
</pallas_src>

<mosaic_0001>
module attributes {stable_mosaic.version = 11 : i64} {
  func.func @_feature_transform_kernel(%arg0: i32, %arg1: memref<128x48xbf16, #tpu.memory_space<vmem>>, %arg2: memref<2x48x128xbf16, #tpu.memory_space<vmem>>, %arg3: memref<2x128x128xbf16, #tpu.memory_space<vmem>>) attributes {dimension_semantics = [#tpu.dimension_semantics<parallel>], iteration_bounds = array<i64: 2>, scalar_prefetch = 0 : i64, scratch_operands = 0 : i64, tpu.core_type = #tpu.core_type<tc>, window_params = [{transform_indices = @transform_0, window_bounds = array<i64: 128, 48>}, {pipeline_mode = #tpu.pipeline_mode<synchronous>, transform_indices = @transform_1, window_bounds = array<i64: 2, 48, 128>}, {transform_indices = @transform_2, window_bounds = array<i64: 2, 128, 128>}]} {
    %c0 = arith.constant 0 : index
    %c0_0 = arith.constant 0 : index
    %0 = vector.load %arg1[%c0, %c0_0] : memref<128x48xbf16, #tpu.memory_space<vmem>>, vector<128x48xbf16>
    %c0_1 = arith.constant 0 : index
    %c0_2 = arith.constant 0 : index
    %c0_3 = arith.constant 0 : index
    %1 = vector.load %arg2[%c0_1, %c0_2, %c0_3] : memref<2x48x128xbf16, #tpu.memory_space<vmem>>, vector<1x48x128xbf16>
    %2 = vector.shape_cast %1 : vector<1x48x128xbf16> to vector<48x128xbf16>
    %cst = arith.constant dense<0.000000e+00> : vector<128x128xf32>
    %3 = tpu.matmul %0, %2, %cst {dimension_numbers = #tpu.dot_dimension_numbers<[1], [0], [0], [1], [0, 0, 1, 1], [], []>} : vector<128x48xbf16>, vector<48x128xbf16>, vector<128x128xf32> -> vector<128x128xf32>
    %4 = arith.truncf %3 : vector<128x128xf32> to vector<128x128xbf16>
    %c0_4 = arith.constant 0 : index
    %c0_5 = arith.constant 0 : index
    %c0_6 = arith.constant 0 : index
    %5 = vector.load %arg3[%c0_4, %c0_5, %c0_6] : memref<2x128x128xbf16, #tpu.memory_space<vmem>>, vector<1x128x128xbf16>
    %6 = vector.shape_cast %5 : vector<1x128x128xbf16> to vector<128x128xbf16>
    %7 = vector.shape_cast %4 : vector<128x128xbf16> to vector<1x128x128xbf16>
    tpu.vector_store %arg3[%c0_4, %c0_5, %c0_6], %7 {strides = array<i32>} : memref<2x128x128xbf16, #tpu.memory_space<vmem>>, vector<1x128x128xbf16>,
    %c1 = arith.constant 1 : index
    %c0_7 = arith.constant 0 : index
    %c0_8 = arith.constant 0 : index
    %8 = vector.load %arg2[%c1, %c0_7, %c0_8] : memref<2x48x128xbf16, #tpu.memory_space<vmem>>, vector<1x48x128xbf16>
    %9 = vector.shape_cast %8 : vector<1x48x128xbf16> to vector<48x128xbf16>
    %cst_9 = arith.constant dense<0.000000e+00> : vector<128x128xf32>
    %10 = tpu.matmul %0, %9, %cst_9 {dimension_numbers = #tpu.dot_dimension_numbers<[1], [0], [0], [1], [0, 0, 1, 1], [], []>} : vector<128x48xbf16>, vector<48x128xbf16>, vector<128x128xf32> -> vector<128x128xf32>
    %11 = arith.truncf %10 : vector<128x128xf32> to vector<128x128xbf16>
    %c1_10 = arith.constant 1 : index
    %c0_11 = arith.constant 0 : index
    %c0_12 = arith.constant 0 : index
    %12 = vector.load %arg3[%c1_10, %c0_11, %c0_12] : memref<2x128x128xbf16, #tpu.memory_space<vmem>>, vector<1x128x128xbf16>
    %13 = vector.shape_cast %12 : vector<1x128x128xbf16> to vector<128x128xbf16>
    %14 = vector.shape_cast %11 : vector<128x128xbf16> to vector<1x128x128xbf16>
    tpu.vector_store %arg3[%c1_10, %c0_11, %c0_12], %14 {strides = array<i32>} : memref<2x128x128xbf16, #tpu.memory_space<vmem>>, vector<1x128x128xbf16>,
    return
  }
  func.func @transform_0(%arg0: i32) -> (i32, i32) {
    %c0_i32 = arith.constant 0 : i32
    %c0_i32_0 = arith.constant 0 : i32
    return %arg0, %c0_i32 : i32, i32
  }
  func.func @transform_1(%arg0: i32) -> (i32, i32, i32) {
    %c0_i32 = arith.constant 0 : i32
    %c0_i32_0 = arith.constant 0 : i32
    %c0_i32_1 = arith.constant 0 : i32
    %c0_i32_2 = arith.constant 0 : i32
    return %c0_i32, %c0_i32_0, %c0_i32_1 : i32, i32, i32
  }
  func.func @transform_2(%arg0: i32) -> (i32, i32, i32) {
    %c0_i32 = arith.constant 0 : i32
    %c0_i32_0 = arith.constant 0 : i32
    %c0_i32_1 = arith.constant 0 : i32
    return %c0_i32, %arg0, %c0_i32_0 : i32, i32, i32
  }
}

</mosaic_0001>

<bundles_post_ra>
// kernel: tpu_custom_call.1
= control target key start
LH: loop header
LB: loop body
LE: loop exit
PB: predicated region body
PF: predicated region fallthrough
CT: control target
= control target key end

     0   :  { %7 = vsyncpa [#allocation3], 0  ;;  %s1295_s0 = inlined_call_operand.vmem [shape: bf16[256,48], index: 0, kind: input, shape index: {}]   ;;  %s1296_s1 = inlined_call_operand.vmem [shape: bf16[2,48,128], index: 1, kind: input, shape index: {}]   ;;  %s1297_s2 = inlined_call_operand.hbm [shape: bf16[2,256,128], index: 2, kind: output, shape index: {}]  }
   0x1   :  { %9 = vsyncpa [#allocation3 + $0x1], 0  ;;  %s1150_s9 = smov 0   ;;  %s1152_s10 = smov 0  }
   0x2   :  { %s1154_s11 = smov 0   ;;  %s1156_s12 = smov 0  }
   0x3 LB: > { %s1171_s13 = sadd.s32 4294967295, %s1126_s12   ;;  %s736_s14 = sadd.s32 4294967294, %s1126_s12   ;;  %s1126_s12 = sphi %s1156_s12, %s1303_s12   ;;  %s1122_s11 = sphi %s1154_s11, %s1302_s11   ;;  %s1118_s10 = sphi %s1152_s10, %s1301_s10   ;;  %s1114_s9 = sphi %s1150_s9, %s1300_s9  }
   0x4   : > { %s1175_s15 = sadd.s32 1, %s1126_s12   ;;  %s69_s16 = sadd.s32 1, %s1122_s11 }
   0x5   : > { %s66_s17 = ssub.s32 %s1126_s12, %s1175_s15  ;;  %p79_p0 = scmp.ne.s32.totalorder %s1122_s11, %s1118_s10 }
   0x6   : > { %p67_p1 = scmp.eq.s32.totalorder %s66_s17, 0  ;;  %p80_p2 = scmp.eq.s32.totalorder %s1171_s13, 1 }
   0x7   : > { %p85_p3 = scmp.ne.s32.totalorder %s1118_s10, %s1114_s9  ;;  %p86_p4 = scmp.eq.s32.totalorder %s736_s14, 1 }
   0x8   : > { %s1186_s18 = scalar_select %p67_p1, %s1122_s11, %s69_s16  }
   0x9   : > { %p1188_p5 = por %p80_p2, %p79_p0  ;;  %p1192_p6 = por %p86_p4, %p85_p3 }
   0xa   : > { %p739_p7 = scmp.ge.s32.totalorder %s1126_s12, 1  ;;  %p116_p8 = scmp.lt.s32.totalorder %s1126_s12, 3 }
   0xc   : > { %p117_p9 = pnand %p739_p7, %p116_p8 }
   0xd   : > { %v1078_v0 = vld [vmem:[%s1296_s1] sm:$0xff] (!%p117_p9)   ;;  %s741_s23 = sshll.u32 (!%p117_p9), %s1171_s13, 4  ;;  %v1079_v1 = vld [vmem:[%s1296_s1 + $0x18] sm:$0xff] (!%p117_p9)   ;;  %v1080_v2 = vld [vmem:[%s1296_s1 + $0x8] sm:$0xff] (!%p117_p9)   ;;  %vm226_vm0 = vcmask (!%p117_p9), 392192   ;;  %s135_s16 = sand.u32 (!%p117_p9), 1, %s1118_s10  }
   0xe   : > { %120 = sbr.rel (%p117_p9) target bundleno = 277 (0x115), region = 28  ;;  %p139_p10 = scmp.lt.s32.totalorder (!%p117_p9), %s741_s23, 31  ;;  %982 = vmatprep.subr.bf16.mxu0 (!%p117_p9), %v1078_v0  ;;  %1004 = vmatprep.subr.bf16.mxu1 (!%p117_p9), %v1079_v1  ;;  %v1081_v3 = vld [vmem:[%s1296_s1 + $0x20] sm:$0xff] (!%p117_p9)   ;;  %v1082_v4 = vld [vmem:[%s1296_s1 + $0x10] sm:$0xff] (!%p117_p9)   ;;  %v1083_v5 = vld [vmem:[%s1296_s1 + $0x28] sm:$0xff] (!%p117_p9)  }
   0xf   : > { %983 = vmatpush3.bf16.msra.mxu0 (!%p117_p9), %v1078_v0  ;;  %1005 = vmatpush3.bf16.msra.mxu1 (!%p117_p9), %v1079_v1  ;;  %s740_s17 = sshll.u32 (!%p117_p9), %s135_s16, 7  ;;  %s632_s22 = scalar_lea.sflag (!%p117_p9), [#allocation3], %s135_s16 }
  0x10   : > { %984 = vmatprep.subr.bf16.mxu0 (!%p117_p9), %v1080_v2  ;;  %1006 = vmatprep.subr.bf16.mxu1 (!%p117_p9), %v1081_v3  ;;  %s1239_s21 = scalar_lea.vmem (!%p117_p9), [#allocation2], %s740_s17 }
  0x13   : > { %985 = vmatpush3.bf16.msra.mxu0 (!%p117_p9), %v1080_v2  ;;  %1007 = vmatpush3.bf16.msra.mxu1 (!%p117_p9), %v1081_v3 }
  0x14   : > { %986 = vmatprep.subr.bf16.mxu0 (!%p117_p9), %v1082_v4  ;;  %1008 = vmatprep.subr.bf16.mxu1 (!%p117_p9), %v1083_v5 }
  0x15   : > { %s1305_s23 = smov (!%p139_p10, %s741_s23), 31 }
  0x16   : > { %s742_s6 = sshll.u32 %s1305_s23, 2 }
  0x17   : > { %s142_s14 = scalar_lea.vmem %s1295_s0, %s742_s6  ;;  %987 = vmatpush3.bf16.msra.mxu0 %v1082_v4  ;;  %1009 = vmatpush3.bf16.msra.mxu1 %v1083_v5 }
  0x18   : > { %v1084_v6 = vld [vmem:[%s142_s14] sm:$0xff]   ;;  %v1085_v7 = vld [vmem:[%s142_s14 + $0x8] sm:$0xff]   ;;  %v1086_v8 = vld [vmem:[%s142_s14 + $0x10] sm:$0xff]  }
  0x19   : > { %988 = vmatprep.mubr.msk.bf16.mxu0 %vm226_vm0, %v1084_v6  ;;  %1010 = vmatprep.mubr.msk.bf16.mxu1 %vm226_vm0, %v1084_v6  ;;  %v1087_v9 = vld [vmem:[%s142_s14 + $0x18] sm:$0xff]   ;;  %v1088_v10 = vld [vmem:[%s142_s14 + $0x20] sm:$0xff]   ;;  %v1089_v11 = vld [vmem:[%s142_s14 + $0x28] sm:$0xff]  }
  0x1a   : > { %989 = vmatmul.mubr.msk.bf16.vlgmr.msra.gmra.mrb[0].mxu0 %vm226_vm0, %v1085_v7  ;;  %1011 = vmatmul.mubr.msk.bf16.vlgmr.msra.gmra.mrb[0].mxu1 %vm226_vm0, %v1085_v7  ;;  %v1090_v12 = vld [vmem:[%s142_s14 + $0x30] sm:$0xff]   ;;  %v1091_v13 = vld [vmem:[%s142_s14 + $0x38] sm:$0xff]  }
  0x1b   : > { %992 = vmatprep.mubr.msk.bf16.mxu0 %vm226_vm0, %v1086_v8  ;;  %1014 = vmatprep.mubr.msk.bf16.mxu1 %vm226_vm0, %v1086_v8 }
  0x22   : > { %993 = vmatmul.mubr.msk.bf16.gmra.mrb[4].mxu0 %vm226_vm0, %v1087_v9  ;;  %1015 = vmatmul.mubr.msk.bf16.gmra.mrb[4].mxu1 %vm226_vm0, %v1087_v9 }
  0x23   : > { %996 = vmatprep.mubr.msk.bf16.mxu0 %vm226_vm0, %v1088_v10  ;;  %1018 = vmatprep.mubr.msk.bf16.mxu1 %vm226_vm0, %v1088_v10 }
  0x2a   : > { %997 = vmatmul.mubr.msk.bf16.gmra.mrb[8].mxu0 %vm226_vm0, %v1089_v11  ;;  %1019 = vmatmul.mubr.msk.bf16.gmra.mrb[8].mxu1 %vm226_vm0, %v1089_v11 }
  0x2b   : > { %1000 = vmatprep.mubr.msk.bf16.mxu0 %vm226_vm0, %v1090_v12  ;;  %1022 = vmatprep.mubr.msk.bf16.mxu1 %vm226_vm0, %v1090_v12 }
  0x32   : > { %1001 = vmatmul.mubr.msk.bf16.gmra.mrb[12].mxu0 %vm226_vm0, %v1091_v13  ;;  %1023 = vmatmul.mubr.msk.bf16.gmra.mrb[12].mxu1 %vm226_vm0, %v1091_v13 }
  0xed   : > { %v990_v14 = vpop.f32.mrb[0].mxu0  ;;  %v1012_v15 = vpop.f32.mrb[0].mxu1 }
  0xee   : > { %v285_v16 = vpop.f32.mrb[1].mxu0  ;;  %v487_v17 = vpop.f32.mrb[1].mxu1 }
  0xef   : > { %v991_v18 = vpop.f32.mrb[2].mxu0  ;;  %v1013_v20 = vpop.f32.mrb[2].mxu1 }
  0xf0   : > { %v873_v19 = vpack.c.bf16 %v991_v18, %v990_v14  ;;  %v288_v21 = vpop.f32.mrb[3].mxu0  ;;  %v913_v22 = vpack.c.bf16 %v1013_v20, %v1012_v15  ;;  %v490_v24 = vpop.f32.mrb[3].mxu1 }
  0xf1   : > { %v868_v23 = vpack.c.bf16 %v288_v21, %v285_v16  ;;  %v908_v25 = vpack.c.bf16 %v490_v24, %v487_v17 }
  0xf2   : > { %945 = vst [vmem:[%s1239_s21 + $0x8] sm:$0xff] %v873_v19   ;;  %953 = vst [vmem:[%s1239_s21 + $0x48] sm:$0xff] %v913_v22  }
  0xf3   : > { %869 = vst [vmem:[%s1239_s21] sm:$0xff] %v868_v23   ;;  %952 = vst [vmem:[%s1239_s21 + $0x40] sm:$0xff] %v908_v25  }
  0xf5   : > { %v994_v26 = vpop.f32.mrb[4].mxu0  ;;  %v1016_v27 = vpop.f32.mrb[4].mxu1 }
  0xf6   : > { %v301_v28 = vpop.f32.mrb[5].mxu0  ;;  %v503_v29 = vpop.f32.mrb[5].mxu1 }
  0xf7   : > { %v995_v30 = vpop.f32.mrb[6].mxu0  ;;  %v1017_v32 = vpop.f32.mrb[6].mxu1 }
  0xf8   : > { %v883_v31 = vpack.c.bf16 %v995_v30, %v994_v26  ;;  %v304_v33 = vpop.f32.mrb[7].mxu0  ;;  %v923_v34 = vpack.c.bf16 %v1017_v32, %v1016_v27  ;;  %v506_v36 = vpop.f32.mrb[7].mxu1 }
  0xf9   : > { %v878_v35 = vpack.c.bf16 %v304_v33, %v301_v28  ;;  %v918_v37 = vpack.c.bf16 %v506_v36, %v503_v29 }
  0xfa   : > { %947 = vst [vmem:[%s1239_s21 + $0x18] sm:$0xff] %v883_v31   ;;  %955 = vst [vmem:[%s1239_s21 + $0x58] sm:$0xff] %v923_v34  }
  0xfb   : > { %946 = vst [vmem:[%s1239_s21 + $0x10] sm:$0xff] %v878_v35   ;;  %954 = vst [vmem:[%s1239_s21 + $0x50] sm:$0xff] %v918_v37  }
  0xfd   : > { %v998_v38 = vpop.f32.mrb[8].mxu0  ;;  %v1020_v39 = vpop.f32.mrb[8].mxu1 }
  0xfe   : > { %v317_v40 = vpop.f32.mrb[9].mxu0  ;;  %v519_v41 = vpop.f32.mrb[9].mxu1 }
  0xff   : > { %v999_v42 = vpop.f32.mrb[10].mxu0  ;;  %v1021_v44 = vpop.f32.mrb[10].mxu1 }
 0x100   : > { %v893_v43 = vpack.c.bf16 %v999_v42, %v998_v38  ;;  %v320_v45 = vpop.f32.mrb[11].mxu0  ;;  %v933_v46 = vpack.c.bf16 %v1021_v44, %v1020_v39  ;;  %v522_v48 = vpop.f32.mrb[11].mxu1 }
 0x101   : > { %v888_v47 = vpack.c.bf16 %v320_v45, %v317_v40  ;;  %v928_v49 = vpack.c.bf16 %v522_v48, %v519_v41 }
 0x102   : > { %949 = vst [vmem:[%s1239_s21 + $0x28] sm:$0xff] %v893_v43   ;;  %957 = vst [vmem:[%s1239_s21 + $0x68] sm:$0xff] %v933_v46  }
 0x103   : > { %948 = vst [vmem:[%s1239_s21 + $0x20] sm:$0xff] %v888_v47   ;;  %956 = vst [vmem:[%s1239_s21 + $0x60] sm:$0xff] %v928_v49  }
 0x105   : > { %v1002_v50 = vpop.f32.mrb[12].mxu0  ;;  %v1024_v51 = vpop.f32.mrb[12].mxu1 }
 0x106   : > { %v333_v52 = vpop.f32.mrb[13].mxu0  ;;  %v535_v53 = vpop.f32.mrb[13].mxu1 }
 0x107   : > { %v1003_v54 = vpop.f32.mrb[14].mxu0  ;;  %v1025_v56 = vpop.f32.mrb[14].mxu1 }
 0x108   : > { %v903_v55 = vpack.c.bf16 %v1003_v54, %v1002_v50  ;;  %v336_v57 = vpop.f32.mrb[15].mxu0  ;;  %v943_v58 = vpack.c.bf16 %v1025_v56, %v1024_v51  ;;  %v538_v60 = vpop.f32.mrb[15].mxu1 }
 0x109   : > { %v898_v59 = vpack.c.bf16 %v336_v57, %v333_v52  ;;  %v938_v61 = vpack.c.bf16 %v538_v60, %v535_v53 }
 0x10a   : > { %951 = vst [vmem:[%s1239_s21 + $0x38] sm:$0xff] %v903_v55   ;;  %959 = vst [vmem:[%s1239_s21 + $0x78] sm:$0xff] %v943_v58  }
 0x10b   : > { %950 = vst [vmem:[%s1239_s21 + $0x30] sm:$0xff] %v898_v59   ;;  %958 = vst [vmem:[%s1239_s21 + $0x70] sm:$0xff] %v938_v61  }
 0x10c   : > { %s864_s23 = sshll.u32 %s1171_s13, 10  ;;  %s661_s24 = sshll.u32 %s1239_s21, 4  ;;  %s662_s24 = int_to_ptr.vmem [resolvable:$true] %s661_s24 }
 0x10d   : > { %s644_s27 = scalar_lea.hbm %s1297_s2, %s864_s23  ;;  %s1128_s28 = smov 1024  }
 0x10e   : > { %1026 = sst [smem:[#allocation5]] (%p1188_p5), %s1128_s28  ;;  %s1129_s29 = smov 2048  }
 0x10f   : > { %1027 = sst [smem:[#allocation5 + $0x1]] (%p1188_p5), %s1129_s29  ;;  %s1130_s30 = smov 16  }
 0x110   : > { %1028 = sst [smem:[#allocation5 + $0x2]] (%p1188_p5), %s1130_s30  ;;  %s1131_s3 = smov 64  }
 0x111   : > { %1029 = sst [smem:[#allocation5 + $0x3]] (%p1188_p5), %s1131_s3  ;;  %s1132_s13 = smov 4  }
 0x112   : > { %1030 = sst [smem:[#allocation5 + $0x4]] (%p1188_p5), %s1131_s3  ;;  %s1133_s4 = smov [#allocation4]  }
 0x113   : > { %1031 = sst [smem:[#allocation5 + $0x5]] (%p1188_p5), %s1132_s13  ;;  %s1134_s5 = smov 0  }
 0x114   : > { %1032 = dma.general (%p1188_p5), %s662_s24, 2048, %s644_s27, %s632_s22, %s1133_s4, [#allocation5], %s1134_s5, 0  }
 0x115 PF: > { %p1038_p11 = scmp.ge.s32.totalorder %s1126_s12, 2  ;;  %s689_s6 = sand.u32 1, %s1114_s9  }
 0x116   : > { %s690_s7 = scalar_lea.sflag [#allocation3], %s689_s6 }
 0x117   : > { %p1035_p12 = pnand %p1038_p11, %p1192_p6 }
 0x119   : > { %1109 = dma.done.wait (!%p1035_p12), %s690_s7, 2048  }
 0x11a   : > { %1111 = vsyncadd (!%p1035_p12), %s690_s7, 4294965248  ;;  %p12_p13 = scmp.ge.s32.totalorder %s1175_s15, 4   ;;  %s1300_s9 = smov %s1118_s10 }
 0x11b   : > { %s1301_s10 = smov %s1122_s11  ;;  %s1302_s11 = smov %s1186_s18 }
 0x11c   : > { %s1303_s12 = smov %s1175_s15  ;;  %14 = sbr.rel (!%p12_p13) target bundleno = 3 (0x3), region = 70 }
 0x123   :  { %695 = vsyncpa [#allocation3], 1 }
 0x124   :  { %697 = vsyncpa [#allocation3 + $0x1], 1 }

</bundles_post_ra>
